<compile_context>
chip_gen: v7x
topology: tpu7x:2x2x1
jax: 0.10.0
libtpu: 0.0.40
codegen_flags: <defaults>
</compile_context>

<pallas_src>
import functools

import jax
import jax.numpy as jnp
from jax.experimental import pallas as pl
from jax.experimental.pallas import tpu as pltpu

LANES = 128
TARGET_BLOCK_BYTES = 2 * 1024 * 1024  # per input, per grid step


def _elastic_loss_kernel(x_ref, y_ref, out_ref, *, alpha, tile_rows,
                         tiles_per_shard, tiles_total, need_skip):
    i = pl.program_id(1)

    @pl.when(i == 0)
    def _():
        out_ref[...] = jnp.zeros_like(out_ref)

    def accumulate():
        d = x_ref[...].astype(jnp.float32) - y_ref[...].astype(jnp.float32)
        ad = jnp.abs(d)
        # alpha*|d| + (1-alpha)*d^2  ==  |d| * (alpha + (1-alpha)*|d|)
        contrib = ad * (alpha + (1.0 - alpha) * ad)
        # VPU-only partial reduction (tile_rows,128) -> (8,128); free reshape
        # (second-minor split by the 8-sublane vreg tiling).
        out_ref[...] += jnp.sum(
            contrib.reshape(tile_rows // 8, 8, LANES), axis=0)[None]

    if need_skip:
        # Only present when tiles_total is odd and split across 2 shards; the
        # single overhanging step re-reads (clamped index map) the last valid
        # tile but skips accumulation. Scalar compare only - no VPU work.
        tile_idx = pl.program_id(0) * tiles_per_shard + i
        pl.when(tile_idx < tiles_total)(accumulate)
    else:
        accumulate()


def elastic_loss(x, y, alpha=0.5, reduction="mean"):
    """JAX/Pallas equivalent of ElasticLoss.forward (reduction 'mean' or 'sum')."""
    assert x.shape == y.shape, "input and target must have the same shape"
    if reduction == "none":
        # TODO(synk): 'none' reduction (per-element output) not wired into this kernel.
        raise NotImplementedError("reduction='none' not implemented")

    # TODO(synk): alpha/shape are baked in as compile-time constants; pass alpha
    # via a (1,1) SMEM scalar if it needs to vary without recompiling.
    alpha = float(alpha)
    n = int(x.size)
    if n == 0:
        return jnp.float32(0.0)

    # Flatten in native dtype (reshape only - no pad, no upcast copies).
    xf = jnp.ravel(x)
    yf = jnp.ravel(y)

    itemsize = max(jnp.dtype(x.dtype).itemsize, jnp.dtype(y.dtype).itemsize)
    tile_rows_target = max(8, (TARGET_BLOCK_BYTES // (LANES * itemsize)) // 8 * 8)

    rows_total = n // LANES
    rows8 = (rows_total // 8) * 8  # sublane-aligned rows -> no in-kernel masking

    total = jnp.float32(0.0)
    rows_k = 0

    if rows8 > 0:
        tile_rows = min(tile_rows_target, rows8)     # multiple of 8
        tiles_total = rows8 // tile_rows             # full tiles only
        rows_k = tiles_total * tile_rows

        # Unconditional 2-TC shard split whenever >=2 tiles (v7x megacore);
        # serial (harmless) on single-TC v5e/v6e.
        num_shards = 2 if tiles_total >= 2 else 1
        tiles_per_shard = pl.cdiv(tiles_total, num_shards)
        need_skip = (num_shards * tiles_per_shard) != tiles_total

        n_k = rows_k * LANES
        x2 = xf[:n_k].reshape(rows_k, LANES)
        y2 = yf[:n_k].reshape(rows_k, LANES)

        if need_skip:
            last = tiles_total - 1

            def in_map(p, i, tps=tiles_per_shard, last=last):
                return (jnp.minimum(p * tps + i, last), 0)
        else:
            def in_map(p, i, tps=tiles_per_shard):
                return (p * tps + i, 0)

        kernel = functools.partial(
            _elastic_loss_kernel,
            alpha=alpha,
            tile_rows=tile_rows,
            tiles_per_shard=tiles_per_shard,
            tiles_total=tiles_total,
            need_skip=need_skip,
        )

        partials = pl.pallas_call(
            kernel,
            out_shape=jax.ShapeDtypeStruct((num_shards, 8, LANES), jnp.float32),
            grid_spec=pltpu.PrefetchScalarGridSpec(
                num_scalar_prefetch=0,
                grid=(num_shards, tiles_per_shard),
                in_specs=[
                    pl.BlockSpec((tile_rows, LANES), in_map),
                    pl.BlockSpec((tile_rows, LANES), in_map),
                ],
                out_specs=pl.BlockSpec((1, 8, LANES), lambda p, i: (p, 0, 0)),
            ),
            compiler_params=pltpu.CompilerParams(
                dimension_semantics=("parallel", "arbitrary"),
                # 2 inputs x 2 buffers x 2 MiB = 8 MiB + f32 intermediates;
                # 32 MiB is safe on v5e/v6e (128 MiB phys) and v7x (64 MiB phys).
                vmem_limit_bytes=32 * 1024 * 1024,
            ),
        )(x2, y2)
        total = total + jnp.sum(partials)

    n_k = rows_k * LANES
    if n_k < n:
        # Remainder (< one tile of rows, plus the sub-128-lane tail): tiny,
        # handled in plain JAX so the kernel hot path never masks.
        dt = xf[n_k:].astype(jnp.float32) - yf[n_k:].astype(jnp.float32)
        adt = jnp.abs(dt)
        total = total + jnp.sum(adt * (alpha + (1.0 - alpha) * adt))

    if reduction == "mean":
        total = total / jnp.float32(n)
    return total


def _ref_loss(x, y, alpha, reduction):
    d = x.astype(jnp.float32) - y.astype(jnp.float32)
    red = jnp.mean if reduction == "mean" else jnp.sum
    return alpha * red(jnp.abs(d)) + (1.0 - alpha) * red(d * d)


if __name__ == "__main__":
    key = jax.random.PRNGKey(0)
    k1, k2, k3, k4 = jax.random.split(key, 4)
    alpha = 0.5

    # Primary small test: NCHW-style tensor (single-tile kernel path).
    shape = (2, 4, 16, 16)
    x = jax.random.normal(k1, shape, dtype=jnp.float32)
    t = jax.random.normal(k2, shape, dtype=jnp.float32)

    loss = jax.block_until_ready(elastic_loss(x, t, alpha=alpha, reduction="mean"))
    ref = _ref_loss(x, t, alpha, "mean")
    assert jnp.allclose(loss, ref, rtol=1e-5, atol=1e-5), (loss, ref)

    loss_sum = jax.block_until_ready(elastic_loss(x, t, alpha=alpha, reduction="sum"))
    ref_sum = _ref_loss(x, t, alpha, "sum")
    assert jnp.allclose(loss_sum, ref_sum, rtol=1e-5, atol=1e-3), (loss_sum, ref_sum)

    # Odd-sized input: exercises the kernel + plain-JAX remainder/tail path.
    xo = jax.random.normal(k3, (3, 5, 17, 13), dtype=jnp.float32)
    to = jax.random.normal(k4, (3, 5, 17, 13), dtype=jnp.float32)
    lo = jax.block_until_ready(elastic_loss(xo, to, alpha=0.3, reduction="mean"))
    ro = _ref_loss(xo, to, 0.3, "mean")
    assert jnp.allclose(lo, ro, rtol=1e-5, atol=1e-5), (lo, ro)

    # bf16 input: native-dtype DMA, larger (dtype-aware) tile sizing.
    xb = jax.random.normal(k1, (2, 4, 128, 256), dtype=jnp.bfloat16)
    tb = jax.random.normal(k2, (2, 4, 128, 256), dtype=jnp.bfloat16)
    lb = jax.block_until_ready(elastic_loss(xb, tb, alpha=alpha, reduction="mean"))
    rb = _ref_loss(xb, tb, alpha, "mean")
    assert jnp.allclose(lb, rb, rtol=1e-3, atol=1e-3), (lb, rb)

    # Multi-tile f32 (8192 rows -> 2 x 4096-row tiles): even 2-shard split.
    xm = jax.random.normal(k3, (8, 4, 128, 256), dtype=jnp.float32)
    tm = jax.random.normal(k4, (8, 4, 128, 256), dtype=jnp.float32)
    lm = jax.block_until_ready(elastic_loss(xm, tm, alpha=0.7, reduction="mean"))
    rm = _ref_loss(xm, tm, 0.7, "mean")
    assert jnp.allclose(lm, rm, rtol=1e-4, atol=1e-5), (lm, rm)

    # Odd tile count (12288 rows -> 3 tiles over 2 shards): clamp + skip path.
    xq = jax.random.normal(k1, (3, 4096, 128), dtype=jnp.float32)
    tq = jax.random.normal(k2, (3, 4096, 128), dtype=jnp.float32)
    lq = jax.block_until_ready(elastic_loss(xq, tq, alpha=alpha, reduction="mean"))
    rq = _ref_loss(xq, tq, alpha, "mean")
    assert jnp.allclose(lq, rq, rtol=1e-4, atol=1e-5), (lq, rq)

    print("KERNEL_OK")
</pallas_src>

<mosaic_0001>
module attributes {stable_mosaic.version = 11 : i64} {
  func.func @_elastic_loss_kernel(%arg0: i32, %arg1: i32, %arg2: memref<16x128xf32, #tpu.memory_space<vmem>>, %arg3: memref<16x128xf32, #tpu.memory_space<vmem>>, %arg4: memref<1x8x128xf32, #tpu.memory_space<vmem>>) attributes {dimension_semantics = [#tpu.dimension_semantics<parallel>, #tpu.dimension_semantics<arbitrary>], iteration_bounds = array<i64: 1, 1>, scalar_prefetch = 0 : i64, scratch_operands = 0 : i64, tpu.core_type = #tpu.core_type<tc>, window_params = [{transform_indices = @transform_0, window_bounds = array<i64: 16, 128>}, {transform_indices = @transform_1, window_bounds = array<i64: 16, 128>}, {transform_indices = @transform_2, window_bounds = array<i64: 1, 8, 128>}]} {
    %c0_i32 = arith.constant 0 : i32
    %0 = arith.cmpi eq, %arg1, %c0_i32 : i32
    %1 = arith.extui %0 : i1 to i32
    %c0_i32_0 = arith.constant 0 : i32
    %2 = arith.cmpi ne, %1, %c0_i32_0 : i32
    scf.if %2 {
      %cst_12 = arith.constant 0.000000e+00 : f32
      %18 = vector.broadcast %cst_12 : f32 to vector<1x8x128xf32>
      %c0_13 = arith.constant 0 : index
      %c0_14 = arith.constant 0 : index
      %c0_15 = arith.constant 0 : index
      %19 = vector.load %arg4[%c0_13, %c0_14, %c0_15] : memref<1x8x128xf32, #tpu.memory_space<vmem>>, vector<1x8x128xf32>
      tpu.vector_store %arg4[%c0_13, %c0_14, %c0_15], %18 {strides = array<i32>} : memref<1x8x128xf32, #tpu.memory_space<vmem>>, vector<1x8x128xf32>,
    } else {
    }
    %c0 = arith.constant 0 : index
    %c0_1 = arith.constant 0 : index
    %3 = vector.load %arg2[%c0, %c0_1] : memref<16x128xf32, #tpu.memory_space<vmem>>, vector<16x128xf32>
    %c0_2 = arith.constant 0 : index
    %c0_3 = arith.constant 0 : index
    %4 = vector.load %arg3[%c0_2, %c0_3] : memref<16x128xf32, #tpu.memory_space<vmem>>, vector<16x128xf32>
    %5 = arith.subf %3, %4 : vector<16x128xf32>
    %6 = math.absf %5 : vector<16x128xf32>
    %cst = arith.constant 5.000000e-01 : f32
    %7 = vector.broadcast %cst : f32 to vector<16x128xf32>
    %8 = arith.mulf %7, %6 : vector<16x128xf32>
    %cst_4 = arith.constant 5.000000e-01 : f32
    %9 = vector.broadcast %cst_4 : f32 to vector<16x128xf32>
    %10 = arith.addf %9, %8 : vector<16x128xf32>
    %11 = arith.mulf %6, %10 : vector<16x128xf32>
    %c0_5 = arith.constant 0 : index
    %c0_6 = arith.constant 0 : index
    %c0_7 = arith.constant 0 : index
    %12 = vector.load %arg4[%c0_5, %c0_6, %c0_7] : memref<1x8x128xf32, #tpu.memory_space<vmem>>, vector<1x8x128xf32>
    %13 = vector.shape_cast %11 : vector<16x128xf32> to vector<2x8x128xf32>
    %cst_8 = arith.constant dense<0.000000e+00> : vector<8x128xf32>
    %14 = vector.multi_reduction <add>, %13, %cst_8 [0] : vector<2x8x128xf32> to vector<8x128xf32>
    %15 = vector.shape_cast %14 : vector<8x128xf32> to vector<1x8x128xf32>
    %16 = arith.addf %12, %15 : vector<1x8x128xf32>
    %c0_9 = arith.constant 0 : index
    %c0_10 = arith.constant 0 : index
    %c0_11 = arith.constant 0 : index
    %17 = vector.load %arg4[%c0_9, %c0_10, %c0_11] : memref<1x8x128xf32, #tpu.memory_space<vmem>>, vector<1x8x128xf32>
    tpu.vector_store %arg4[%c0_9, %c0_10, %c0_11], %16 {strides = array<i32>} : memref<1x8x128xf32, #tpu.memory_space<vmem>>, vector<1x8x128xf32>,
    return
  }
  func.func @transform_0(%arg0: i32, %arg1: i32) -> (i32, i32) {
    %c1_i32 = arith.constant 1 : i32
    %0 = arith.muli %arg0, %c1_i32 : i32
    %1 = arith.addi %0, %arg1 : i32
    %c0_i32 = arith.constant 0 : i32
    %c0_i32_0 = arith.constant 0 : i32
    return %1, %c0_i32 : i32, i32
  }
  func.func @transform_1(%arg0: i32, %arg1: i32) -> (i32, i32) {
    %c1_i32 = arith.constant 1 : i32
    %0 = arith.muli %arg0, %c1_i32 : i32
    %1 = arith.addi %0, %arg1 : i32
    %c0_i32 = arith.constant 0 : i32
    %c0_i32_0 = arith.constant 0 : i32
    return %1, %c0_i32 : i32, i32
  }
  func.func @transform_2(%arg0: i32, %arg1: i32) -> (i32, i32, i32) {
    %c0_i32 = arith.constant 0 : i32
    %c0_i32_0 = arith.constant 0 : i32
    %c0_i32_1 = arith.constant 0 : i32
    return %arg0, %c0_i32, %c0_i32_0 : i32, i32, i32
  }
}

</mosaic_0001>

<bundles_post_ra>
// kernel: tpu_custom_call.1
= control target key start
LH: loop header
LB: loop body
LE: loop exit
PB: predicated region body
PF: predicated region fallthrough
CT: control target
= control target key end

     0   :  { %7 = vsyncpa [#allocation3], 0  ;;  %s225_s0 = inlined_call_operand.hbm [shape: f32[16,128], index: 0, kind: input, shape index: {}]   ;;  %s226_s1 = inlined_call_operand.hbm [shape: f32[16,128], index: 1, kind: input, shape index: {}]   ;;  %s227_s2 = inlined_call_operand.hbm [shape: f32[1,8,128], index: 2, kind: output, shape index: {}]  }
   0x1   :  { %8 = vsyncpa [#allocation6], 0 }
   0x2   :  { %9 = vsyncpa [#allocation4], 0  ;;  %s169_s9 = smov [#allocation2]   ;;  %s97_s13 = scalar_lea.hbm %s225_s0, 256 }
   0x3   :  { %s19_s10 = sshll.u32 %s169_s9, 4  ;;  %p98_p0 = scmp.ne.s32.totalorder %s225_s0, %s97_s13  ;;  %s20_s10 = int_to_ptr.vmem [resolvable:$true] %s19_s10 }
   0x4   :  { %p101_p1 = scmp.lt.u32.totalorder %s97_s13, %s225_s0 }
   0x6   :  { %p103_p2 = pnand %p101_p1, %p98_p0 }
   0x8   :  { %106 = shalt.err (!%p103_p2)
}
   0x9   :  { %s107_s18 = scalar_lea.vmem %s20_s10, 256  ;;  %p112_p4 = scmp.lt.s32.totalorder %s20_s10, %s20_s10 }
   0xa   :  { %p108_p3 = scmp.ne.s32.totalorder %s20_s10, %s107_s18  ;;  %p113_p5 = scmp.lt.s32.totalorder %s107_s18, %s107_s18 }
   0xc   :  { %p114_p6 = por %p113_p5, %p112_p4 }
   0xe   :  { %p115_p7 = pnand %p114_p6, %p108_p3 }
  0x10   :  { %118 = shalt.err (!%p115_p7)
}
  0x11   :  { %s170_s19 = smov 128   ;;  %s171_s20 = smov 8  }
  0x12   :  { %25 = dma.hbm_to_vmem [thread:$0]  %s225_s0, 256, %s20_s10, [#allocation3], %s170_s19, %s170_s19, %s171_s20  }
  0x13   :  { %s172_s23 = smov [#allocation5]   ;;  %s119_s27 = scalar_lea.hbm %s226_s1, 256 }
  0x14   :  { %s35_s24 = sshll.u32 %s172_s23, 4  ;;  %p120_p8 = scmp.ne.s32.totalorder %s226_s1, %s119_s27  ;;  %s36_s24 = int_to_ptr.vmem [resolvable:$true] %s35_s24 }
  0x15   :  { %p123_p9 = scmp.lt.u32.totalorder %s119_s27, %s226_s1 }
  0x17   :  { %p125_p10 = pnand %p123_p9, %p120_p8 }
  0x19   :  { %128 = shalt.err (!%p125_p10)
}
  0x1a   :  { %s129_s4 = scalar_lea.vmem %s36_s24, 256  ;;  %p134_p12 = scmp.lt.s32.totalorder %s36_s24, %s36_s24 }
  0x1b   :  { %p130_p11 = scmp.ne.s32.totalorder %s36_s24, %s129_s4  ;;  %p135_p13 = scmp.lt.s32.totalorder %s129_s4, %s129_s4 }
  0x1d   :  { %p136_p0 = por %p135_p13, %p134_p12 }
  0x1f   :  { %p137_p1 = pnand %p136_p0, %p130_p11 }
  0x21   :  { %140 = shalt.err (!%p137_p1)
}
  0x22   :  { %41 = dma.hbm_to_vmem [thread:$0]  %s226_s1, 256, %s36_s24, [#allocation6], %s170_s19, %s170_s19, %s171_s20  }
  0x23   :  { %163 = dma.done.wait [#allocation3], 256  }
  0x24   :  { %164 = vsyncadd [#allocation3], 4294967040 }
  0x25   :  { %165 = dma.done.wait [#allocation6], 256  }
  0x26   :  { %166 = vsyncadd [#allocation6], 4294967040  ;;  %v57_v0 = vld [vmem:[#allocation2] sm:$0xff]  ;;  %v58_v1 = vld [vmem:[#allocation2 + $0x8] sm:$0xff]  ;;  %s173_s6 = smov [#allocation7]  }
  0x27   :  { %v59_v2 = vld [vmem:[#allocation5] sm:$0xff]  ;;  %v60_v3 = vld [vmem:[#allocation5 + $0x8] sm:$0xff]  ;;  %s81_s1 = sshll.u32 %s173_s6, 4  ;;  %s82_s1 = int_to_ptr.vmem [resolvable:$true] %s81_s1 }
  0x28   :  { %v61_v4 = vsub.f32 %v57_v0, %v59_v2  ;;  %v62_v5 = vsub.f32 %v58_v1, %v60_v3  ;;  %s141_s7 = scalar_lea.vmem %s82_s1, 128  ;;  %p146_p3 = scmp.lt.s32.totalorder %s82_s1, %s82_s1 }
  0x29   :  { %p142_p2 = scmp.ne.s32.totalorder %s82_s1, %s141_s7  ;;  %p147_p4 = scmp.lt.s32.totalorder %s141_s7, %s141_s7 }
  0x2a   :  { %v63_v6 = vand.u32 2147483647, %v61_v4  ;;  %v64_v7 = vand.u32 2147483647, %v62_v5 }
  0x2b   :  { %p148_p5 = por %p147_p4, %p146_p3 }
  0x2c   :  { %v65_v8 = vmul.f32 0.5, %v63_v6  ;;  %v66_v9 = vmul.f32 0.5, %v64_v7 }
  0x2d   :  { %p149_p6 = pnand %p148_p5, %p142_p2 }
  0x2e   :  { %v67_v10 = vadd.f32 0.5, %v65_v8  ;;  %v68_v11 = vadd.f32 0.5, %v66_v9 }
  0x30   :  { %v69_v12 = vmul.f32 %v67_v10, %v63_v6  ;;  %v70_v13 = vmul.f32 %v68_v11, %v64_v7 }
  0x32   :  { %v72_v14 = vadd.f32 %v70_v13, %v69_v12 }
  0x34   :  { %74 = vst [vmem:[#allocation7] sm:$0xff] %v72_v14 }
  0x35   :  { %152 = shalt.err (!%p149_p6)
}
  0x36   :  { %s153_s10 = scalar_lea.hbm %s227_s2, 128 }
  0x37   :  { %p154_p7 = scmp.ne.s32.totalorder %s227_s2, %s153_s10  ;;  %p157_p8 = scmp.lt.u32.totalorder %s153_s10, %s227_s2 }
  0x39   :  { %p159_p9 = pnand %p157_p8, %p154_p7 }
  0x3b   :  { %162 = shalt.err (!%p159_p9)
}
  0x3c   :  { %84 = dma.vmem_to_hbm [thread:$0]  %s82_s1, 128, %s227_s2, [#allocation4]  }
  0x3d   :  { %167 = dma.done.wait [#allocation4], 128  }
  0x3e   :  { %168 = vsyncadd [#allocation4], 4294967168 }
  0x3f   :  { %88 = vsyncpa [#allocation3], 1 }
  0x40   :  { %89 = vsyncpa [#allocation6], 1 }
  0x41   :  { %90 = vsyncpa [#allocation4], 1 }

</bundles_post_ra>
